<compile_context>
chip_gen: v7x
topology: tpu7x:2x2x1
jax: 0.10.0
libtpu: 0.0.40
codegen_flags: <defaults>
</compile_context>

<pallas_src>
import math

import jax
import jax.numpy as jnp
from jax.experimental import pallas as pl
from jax.experimental.pallas import tpu as pltpu


def _copy_kernel(x_ref, o_ref):
    # Pure identity on the current (block_rows, block_cols) tile.
    o_ref[...] = x_ref[...]


_TARGET_BLOCK_BYTES = 8 * 1024 * 1024   # ~8 MiB/block -> ~32 MiB pipelined footprint
_VMEM_LIMIT_BYTES = 48 * 1024 * 1024    # 2 refs x 2 buffers x 8 MiB + headroom


def _sublane_granularity(itemsize: int) -> int:
    # Min sublane tile: 8 rows for 4-byte, 16 for 2-byte, 32 for 1-byte dtypes.
    return 8 * max(1, 4 // itemsize)


def _plan(batch: int, flat: int, itemsize: int):
    """Choose a 2D view + block + grid for a padding-free identity copy.

    Returns (view_shape, block_shape, grid).  Guarantees each block dim is
    either a multiple of the dtype tile (g, 128) or equal to the full array
    extent, so the BlockSpec is Mosaic-legal; ragged edges are handled by
    pl.cdiv grids with masked partial blocks (never by materializing padding).
    """
    total = batch * flat
    g = _sublane_granularity(itemsize)
    target = max(1, _TARGET_BLOCK_BYTES // itemsize)   # elements per block

    if total % 128 == 0:
        # Lane- and sublane-dense flat view: widest cols in {1024..128} dividing total.
        cols = next(c for c in (1024, 512, 256, 128) if total % c == 0)
        rows = total // cols
        if rows * cols <= target:
            return (rows, cols), (rows, cols), (1, 1)      # single full-extent block
        block_rows = max(g, ((target // cols) // g) * g)   # multiple of g, <= rows
        return (rows, cols), (block_rows, cols), (pl.cdiv(rows, block_rows), 1)

    # Ragged flat size: keep the natural (batch, flat) view.  Account for the
    # (g, 128) VMEM tile padding when sizing blocks.
    padded_flat = -(-flat // 128) * 128
    padded_batch = -(-batch // g) * g
    if padded_batch * padded_flat <= target:
        return (batch, flat), (batch, flat), (1, 1)        # single full-extent block

    col_budget = target // g
    if col_budget >= padded_flat:
        # Whole rows fit in a block; spend the remaining budget on more rows.
        bc = flat                                          # full extent in lanes
        br_fit = ((target // padded_flat) // g) * g        # multiple of g (>= g here)
        br = batch if br_fit >= batch else br_fit
    else:
        # Tile the lane dimension too (128-multiple chunks, masked tail).
        br = batch if batch <= g else g                    # full extent or multiple of g
        bc = max(128, (col_budget // 128) * 128)
    return (batch, flat), (br, bc), (pl.cdiv(batch, br), pl.cdiv(flat, bc))


def _pallas_identity_copy(x2d: jax.Array, block_shape, grid) -> jax.Array:
    rows, cols = x2d.shape
    return pl.pallas_call(
        _copy_kernel,
        out_shape=jax.ShapeDtypeStruct((rows, cols), x2d.dtype),
        grid_spec=pltpu.PrefetchScalarGridSpec(
            num_scalar_prefetch=0,
            grid=grid,
            in_specs=[pl.BlockSpec(block_shape, lambda i, j: (i, j))],
            out_specs=pl.BlockSpec(block_shape, lambda i, j: (i, j)),
        ),
        compiler_params=pltpu.CompilerParams(
            dimension_semantics=("parallel", "parallel"),  # shards blocks over v7x's 2 TCs
            vmem_limit_bytes=_VMEM_LIMIT_BYTES,            # mandatory on v5e (16 MiB default)
        ),
    )(x2d)


class Reshape:
    """JAX/Pallas equivalent of the PyTorch Reshape module.

    Reshapes (batch, s0*s1*...*sn) -> (batch, s0, s1, ..., sn), keeping batch.
    """

    def __init__(self, *shape: int) -> None:
        self.shape = (1,) + tuple(shape)

    def __call__(self, x: jax.Array) -> jax.Array:
        batch = x.shape[0]
        flat = math.prod(self.shape[1:])
        assert math.prod(x.shape[1:]) == flat, (
            f"input of shape {x.shape} cannot be reshaped to (batch,) + "
            f"{self.shape[1:]}"
        )
        out_shape = (batch,) + tuple(self.shape[1:])

        itemsize = jnp.dtype(x.dtype).itemsize
        view_shape, block_shape, grid = _plan(batch, flat, itemsize)

        x2d = x.reshape(view_shape)                 # metadata-only (row-major)
        y2d = _pallas_identity_copy(x2d, block_shape, grid)
        return y2d.reshape(out_shape)               # metadata-only


if __name__ == "__main__":
    key = jax.random.PRNGKey(0)

    # Primary case: (batch, 4*16*16) -> (batch, 4, 16, 16); aligned, single block.
    t1 = (4, 16, 16)
    b1 = 2
    x1 = jax.random.normal(key, (b1, math.prod(t1)), dtype=jnp.float32)
    y1 = Reshape(*t1)(x1)
    jax.block_until_ready(y1)
    assert y1.shape == (b1,) + t1, y1.shape
    assert y1.dtype == x1.dtype
    assert bool(jnp.array_equal(y1, x1.reshape((b1,) + t1)))

    # Ragged flat size (flat = 105): padding-free single full-extent block.
    t2 = (3, 5, 7)
    b2 = 2
    x2 = jax.random.normal(jax.random.PRNGKey(1), (b2, math.prod(t2)), jnp.float32)
    y2 = Reshape(*t2)(x2)
    jax.block_until_ready(y2)
    assert bool(jnp.array_equal(y2, x2.reshape((b2,) + t2)))

    # Aligned multi-block f32 with masked tail row-block (rows=5120, block_rows=2048, grid=3).
    t3 = (512, 32, 32)
    b3 = 10
    x3 = jax.random.normal(jax.random.PRNGKey(2), (b3, math.prod(t3)), jnp.float32)
    y3 = Reshape(*t3)(x3)
    jax.block_until_ready(y3)
    assert bool(jnp.array_equal(y3, x3.reshape((b3,) + t3)))

    # bf16 multi-block: exercises the 16-row sublane granularity.
    t4 = (768, 32, 32)
    b4 = 8
    x4 = jax.random.normal(jax.random.PRNGKey(3), (b4, math.prod(t4)), jnp.bfloat16)
    y4 = Reshape(*t4)(x4)
    jax.block_until_ready(y4)
    assert bool(jnp.array_equal(y4, x4.reshape((b4,) + t4)))

    # Large ragged flat size: lane-tiled copy with masked tail, still no padding.
    t5 = (300007,)
    b5 = 3
    x5 = jax.random.normal(jax.random.PRNGKey(4), (b5, math.prod(t5)), jnp.float32)
    y5 = Reshape(*t5)(x5)
    jax.block_until_ready(y5)
    assert bool(jnp.array_equal(y5, x5.reshape((b5,) + t5)))

    print("KERNEL_OK")
</pallas_src>

<mosaic_0001>
module attributes {stable_mosaic.version = 11 : i64} {
  func.func @_copy_kernel(%arg0: i32, %arg1: i32, %arg2: memref<2x1024xf32, #tpu.memory_space<vmem>>, %arg3: memref<2x1024xf32, #tpu.memory_space<vmem>>) attributes {dimension_semantics = [#tpu.dimension_semantics<parallel>, #tpu.dimension_semantics<parallel>], iteration_bounds = array<i64: 1, 1>, scalar_prefetch = 0 : i64, scratch_operands = 0 : i64, tpu.core_type = #tpu.core_type<tc>, window_params = [{transform_indices = @transform_0, window_bounds = array<i64: 2, 1024>}, {transform_indices = @transform_1, window_bounds = array<i64: 2, 1024>}]} {
    %c0 = arith.constant 0 : index
    %c0_0 = arith.constant 0 : index
    %0 = vector.load %arg2[%c0, %c0_0] : memref<2x1024xf32, #tpu.memory_space<vmem>>, vector<2x1024xf32>
    %c0_1 = arith.constant 0 : index
    %c0_2 = arith.constant 0 : index
    %1 = vector.load %arg3[%c0_1, %c0_2] : memref<2x1024xf32, #tpu.memory_space<vmem>>, vector<2x1024xf32>
    tpu.vector_store %arg3[%c0_1, %c0_2], %0 {strides = array<i32>} : memref<2x1024xf32, #tpu.memory_space<vmem>>, vector<2x1024xf32>,
    return
  }
  func.func @transform_0(%arg0: i32, %arg1: i32) -> (i32, i32) {
    %c0_i32 = arith.constant 0 : i32
    return %arg0, %arg1 : i32, i32
  }
  func.func @transform_1(%arg0: i32, %arg1: i32) -> (i32, i32) {
    %c0_i32 = arith.constant 0 : i32
    return %arg0, %arg1 : i32, i32
  }
}

</mosaic_0001>

<bundles_post_ra>
// kernel: tpu_custom_call.1
= control target key start
LH: loop header
LB: loop body
LE: loop exit
PB: predicated region body
PF: predicated region fallthrough
CT: control target
= control target key end

     0   :  { %6 = vsyncpa [#allocation3], 0  ;;  %s126_s0 = inlined_call_operand.hbm [shape: f32[2,1024], index: 0, kind: input, shape index: {}]   ;;  %s127_s1 = inlined_call_operand.hbm [shape: f32[2,1024], index: 1, kind: output, shape index: {}]  }
   0x1   :  { %7 = vsyncpa [#allocation4], 0  ;;  %s90_s6 = smov [#allocation2]   ;;  %s42_s10 = scalar_lea.hbm %s126_s0, 256 }
   0x2   :  { %s14_s7 = sshll.u32 %s90_s6, 4  ;;  %p43_p0 = scmp.ne.s32.totalorder %s126_s0, %s42_s10  ;;  %s15_s7 = int_to_ptr.vmem [resolvable:$true] %s14_s7 }
   0x3   :  { %p46_p1 = scmp.lt.u32.totalorder %s42_s10, %s126_s0 }
   0x5   :  { %p48_p2 = pnand %p46_p1, %p43_p0 }
   0x7   :  { %51 = shalt.err (!%p48_p2)
}
   0x8   :  { %s52_s15 = scalar_lea.vmem %s15_s7, 256  ;;  %p57_p4 = scmp.lt.s32.totalorder %s15_s7, %s15_s7 }
   0x9   :  { %p53_p3 = scmp.ne.s32.totalorder %s15_s7, %s52_s15  ;;  %p58_p5 = scmp.lt.s32.totalorder %s52_s15, %s52_s15 }
   0xb   :  { %p59_p6 = por %p58_p5, %p57_p4 }
   0xd   :  { %p60_p7 = pnand %p59_p6, %p53_p3 }
   0xf   :  { %63 = shalt.err (!%p60_p7)
}
  0x10   :  { %17 = dma.hbm_to_vmem [thread:$0]  %s126_s0, 256, %s15_s7, [#allocation3]  }
  0x11   :  { %86 = dma.done.wait [#allocation3], 256  }
  0x12   :  { %87 = vsyncadd [#allocation3], 4294967040  ;;  %s91_s18 = smov [#allocation5]   ;;  %v21_v0 = vld [vmem:[#allocation2] sm:$0xff]  ;;  %v22_v1 = vld [vmem:[#allocation2 + $0x8] sm:$0xff] }
  0x13   :  { %s31_s19 = sshll.u32 %s91_s18, 4  ;;  %23 = vst [vmem:[#allocation5] sm:$0xff] %v21_v0  ;;  %24 = vst [vmem:[#allocation5 + $0x8] sm:$0xff] %v22_v1  ;;  %s32_s19 = int_to_ptr.vmem [resolvable:$true] %s31_s19 }
  0x14   :  { %s64_s20 = scalar_lea.vmem %s32_s19, 256  ;;  %p69_p9 = scmp.lt.s32.totalorder %s32_s19, %s32_s19 }
  0x15   :  { %p65_p8 = scmp.ne.s32.totalorder %s32_s19, %s64_s20  ;;  %p70_p10 = scmp.lt.s32.totalorder %s64_s20, %s64_s20 }
  0x17   :  { %p71_p11 = por %p70_p10, %p69_p9 }
  0x19   :  { %p72_p12 = pnand %p71_p11, %p65_p8 }
  0x1b   :  { %75 = shalt.err (!%p72_p12)
}
  0x1c   :  { %s76_s0 = scalar_lea.hbm %s127_s1, 256 }
  0x1d   :  { %p77_p13 = scmp.ne.s32.totalorder %s127_s1, %s76_s0  ;;  %p80_p0 = scmp.lt.u32.totalorder %s76_s0, %s127_s1 }
  0x1f   :  { %p82_p1 = pnand %p80_p0, %p77_p13 }
  0x21   :  { %85 = shalt.err (!%p82_p1)
}
  0x22   :  { %34 = dma.vmem_to_hbm [thread:$0]  %s32_s19, 256, %s127_s1, [#allocation4]  }
  0x23   :  { %88 = dma.done.wait [#allocation4], 256  }
  0x24   :  { %89 = vsyncadd [#allocation4], 4294967040 }
  0x25   :  { %38 = vsyncpa [#allocation3], 1 }
  0x26   :  { %39 = vsyncpa [#allocation4], 1 }

</bundles_post_ra>
